<compile_context>
chip_gen: v7x
topology: tpu7x:2x2x1
jax: 0.10.0
libtpu: 0.0.40
codegen_flags: <defaults>
</compile_context>

<pallas_src>
import jax
import jax.numpy as jnp
from jax.experimental import pallas as pl
from jax.experimental.pallas import tpu as pltpu


def littlenn_kernel(x_ref, w_ref, b_ref, o_ref):
    # x: (block_rows, pack*sizeInput)  packed activations
    # w: (pack*sizeInput, pack*sizeOutput) block-diagonal folded weight (VMEM-resident)
    # b: (1, pack*sizeOutput)
    # One MXU push + one VPU add + one EUP tanh per tile; f32 accumulate/epilogue.
    y = jnp.dot(x_ref[...], w_ref[...], preferred_element_type=jnp.float32)
    o_ref[...] = jnp.tanh(y + b_ref[...]).astype(o_ref.dtype)


def fold_littlenn_params(w1, w2, b2, pack, *, weight_dtype=jnp.float32):
    """Fold Linear1 (bias-free) + Linear2 into one block-diagonal packed weight.

    w1: (sizeInter, sizeInput)  PyTorch nn.Linear layout (bias=False)
    w2: (sizeOutput, sizeInter) PyTorch nn.Linear layout
    b2: (sizeOutput,)
    Returns w_bd: (pack*sizeInput, pack*sizeOutput), b_bd: (1, pack*sizeOutput).
    Hoist/cache this when weights are static.
    """
    size_inter, size_input = w1.shape
    size_output = w2.shape[0]
    assert w2.shape == (size_output, size_inter), "weight shape mismatch"
    # Valid only because Linear1 has no bias and no nonlinearity sits between
    # the two linears.
    wf = jnp.dot(w1.astype(jnp.float32).T, w2.astype(jnp.float32).T)  # (si, so)
    w_bd = jnp.kron(jnp.eye(pack, dtype=jnp.float32), wf)             # block-diag
    b_bd = jnp.tile(b2.astype(jnp.float32), pack).reshape(1, pack * size_output)
    return w_bd.astype(weight_dtype), b_bd


def littlenn_forward(x, w1, w2, b2, *, block_rows=512):
    """Forward pass of LittleNN.

    x  : (B, ...) flattening to (B, sizeInput)            [nn.Flatten]
    w1 : (sizeInter, sizeInput)   PyTorch nn.Linear layout (bias=False)
    w2 : (sizeOutput, sizeInter)  PyTorch nn.Linear layout
    b2 : (sizeOutput,)
    block_rows : batch tile measured in *packed* rows (1 packed row = `pack`
                 logical batch rows).
    returns (B, sizeOutput) float32
    """
    B = x.shape[0]
    x2d = x.reshape(B, -1)                                   # nn.Flatten()
    if x2d.dtype != jnp.bfloat16:                            # keep bf16 native
        x2d = x2d.astype(jnp.float32)
    size_input = x2d.shape[1]
    size_inter, si_w = w1.shape
    size_output = w2.shape[0]
    assert si_w == size_input, "w1 does not match flattened input size"

    # Pack `pack` logical rows per 128-lane row (free row-major reshape).
    pack = max(1, 128 // size_input) if size_input <= 128 else 1
    n_in = pack * size_input
    n_out = pack * size_output

    w_bd, b_bd = fold_littlenn_params(
        w1, w2, b2, pack,
        weight_dtype=jnp.bfloat16 if x2d.dtype == jnp.bfloat16 else jnp.float32)

    # Pad only to the packing factor (<= pack-1 rows, and only when needed).
    # Block-grid raggedness along the packed-row axis is handled by Pallas
    # (out-of-bounds writes are dropped), so no padding to block_rows.
    b_pad = pl.cdiv(B, pack) * pack
    if b_pad != B:
        x2d = jnp.pad(x2d, ((0, b_pad - B), (0, 0)))
    rows = b_pad // pack
    xp = x2d.reshape(rows, n_in)

    # Tile the packed-row axis; keep >= 4 grid steps when possible so the
    # "parallel" batch axis shards across both TensorCores on v7x and input
    # double-buffering stays active.
    if rows <= block_rows:
        block_rows_eff = rows                         # single full-extent tile
    else:
        block_rows_eff = min(block_rows, max(8, pl.cdiv(rows, 4)))
        block_rows_eff = max(8, (block_rows_eff // 8) * 8)
    grid = (pl.cdiv(rows, block_rows_eff),)

    # Explicit VMEM budget: lane-padded, double-buffered tiles + resident
    # weight/bias + margin.  Floor at the universally-safe 16 MiB, cap well
    # below v7x's 64 MiB physical VMEM.
    lane_pad = lambda n: pl.cdiv(n, 128) * 128
    elt = jnp.dtype(x2d.dtype).itemsize
    vmem_limit = (2 * block_rows_eff * lane_pad(n_in) * elt      # x tiles
                  + 2 * block_rows_eff * lane_pad(n_out) * 4     # out tiles (f32)
                  + 2 * lane_pad(n_in) * lane_pad(n_out) * 4     # weight
                  + (2 << 20))                                   # slack
    vmem_limit = int(min(max(vmem_limit, 16 << 20), 48 << 20))

    out = pl.pallas_call(
        littlenn_kernel,
        out_shape=jax.ShapeDtypeStruct((rows, n_out), jnp.float32),
        grid=grid,
        in_specs=[
            # Packed activations: stream per batch tile (double-buffered).
            pl.BlockSpec((block_rows_eff, n_in), lambda i: (i, 0)),
            # Folded block-diagonal weight + bias: same block every step ->
            # VMEM-resident across the grid.
            pl.BlockSpec((n_in, n_out), lambda i: (0, 0)),
            pl.BlockSpec((1, n_out), lambda i: (0, 0)),
        ],
        out_specs=pl.BlockSpec((block_rows_eff, n_out), lambda i: (i, 0)),
        compiler_params=pltpu.CompilerParams(
            dimension_semantics=("parallel",),   # megacore sharding on v7x
            vmem_limit_bytes=vmem_limit,
        ),
    )(xp, w_bd, b_bd)

    out = out.reshape(b_pad, size_output)        # free row-major un-pack
    return out[:B] if b_pad != B else out


if __name__ == "__main__":
    # Module hyper-parameters (defaults from LittleNN.__init__).
    size_input, size_inter, size_output = 16, 16, 3

    key = jax.random.PRNGKey(0)
    kx, k1, k2, k3, kx2 = jax.random.split(key, 5)

    # Deterministic synthetic parameters (PyTorch nn.Linear weight layout).
    w1 = jax.random.normal(k1, (size_inter, size_input), jnp.float32) * 0.1
    w2 = jax.random.normal(k2, (size_output, size_inter), jnp.float32) * 0.1
    b2 = jax.random.normal(k3, (size_output,), jnp.float32) * 0.1

    fwd = jax.jit(littlenn_forward, static_argnames=("block_rows",))

    def reference(xin):
        x2d = xin.reshape(xin.shape[0], -1)
        return jnp.tanh((x2d @ w1.T) @ w2.T + b2[None, :])

    # Check 1: batch multiple of the pack factor -> zero-copy packing path.
    batch = 64
    x = jax.random.normal(kx, (batch, 4, 4), jnp.float32)   # flattens to 16
    out = jax.block_until_ready(fwd(x, w1, w2, b2))
    assert out.shape == (batch, size_output)
    assert jnp.allclose(out, reference(x), atol=1e-5), "mismatch vs reference"

    # Check 2: multi-step ragged grid (25 packed rows, tile of 8 -> 4 steps,
    # last tile partially out of bounds; OOB writes dropped).
    batch2 = 200
    x_big = jax.random.normal(kx2, (batch2, 4, 4), jnp.float32)
    out2 = jax.block_until_ready(fwd(x_big, w1, w2, b2, block_rows=8))
    assert out2.shape == (batch2, size_output)
    assert jnp.allclose(out2, reference(x_big), atol=1e-5), "mismatch (ragged grid)"

    # Check 3: batch not a multiple of the pack factor -> small pad + slice.
    batch3 = 20
    x_odd = jax.random.normal(kx, (batch3, 4, 4), jnp.float32)
    out3 = jax.block_until_ready(fwd(x_odd, w1, w2, b2))
    assert out3.shape == (batch3, size_output)
    assert jnp.allclose(out3, reference(x_odd), atol=1e-5), "mismatch (padded batch)"

    # TODO(synk): trainNet/testNet/predX (optimizer, loss, data loaders) are
    # host-side training utilities, not part of the forward pass; not ported.
    print("KERNEL_OK")
</pallas_src>

<mosaic_0001>
module attributes {stable_mosaic.version = 11 : i64} {
  func.func @littlenn_kernel(%arg0: i32, %arg1: memref<8x128xf32, #tpu.memory_space<vmem>>, %arg2: memref<128x24xf32, #tpu.memory_space<vmem>>, %arg3: memref<1x24xf32, #tpu.memory_space<vmem>>, %arg4: memref<8x24xf32, #tpu.memory_space<vmem>>) attributes {dimension_semantics = [#tpu.dimension_semantics<parallel>], iteration_bounds = array<i64: 1>, scalar_prefetch = 0 : i64, scratch_operands = 0 : i64, tpu.core_type = #tpu.core_type<tc>, window_params = [{transform_indices = @transform_0, window_bounds = array<i64: 8, 128>}, {pipeline_mode = #tpu.pipeline_mode<synchronous>, transform_indices = @transform_1, window_bounds = array<i64: 128, 24>}, {pipeline_mode = #tpu.pipeline_mode<synchronous>, transform_indices = @transform_2, window_bounds = array<i64: 1, 24>}, {transform_indices = @transform_3, window_bounds = array<i64: 8, 24>}]} {
    %c0 = arith.constant 0 : index
    %c0_0 = arith.constant 0 : index
    %0 = vector.load %arg1[%c0, %c0_0] : memref<8x128xf32, #tpu.memory_space<vmem>>, vector<8x128xf32>
    %c0_1 = arith.constant 0 : index
    %c0_2 = arith.constant 0 : index
    %1 = vector.load %arg2[%c0_1, %c0_2] : memref<128x24xf32, #tpu.memory_space<vmem>>, vector<128x24xf32>
    %cst = arith.constant dense<0.000000e+00> : vector<8x24xf32>
    %2 = tpu.matmul %0, %1, %cst {dimension_numbers = #tpu.dot_dimension_numbers<[1], [0], [0], [1], [0, 0, 1, 1], [], []>} : vector<8x128xf32>, vector<128x24xf32>, vector<8x24xf32> -> vector<8x24xf32>
    %c0_3 = arith.constant 0 : index
    %c0_4 = arith.constant 0 : index
    %3 = vector.load %arg3[%c0_3, %c0_4] : memref<1x24xf32, #tpu.memory_space<vmem>>, vector<1x24xf32>
    %4 = vector.broadcast %3 : vector<1x24xf32> to vector<8x24xf32>
    %5 = arith.addf %2, %4 : vector<8x24xf32>
    %6 = math.tanh %5 : vector<8x24xf32>
    %c0_5 = arith.constant 0 : index
    %c0_6 = arith.constant 0 : index
    %7 = vector.load %arg4[%c0_5, %c0_6] : memref<8x24xf32, #tpu.memory_space<vmem>>, vector<8x24xf32>
    tpu.vector_store %arg4[%c0_5, %c0_6], %6 {strides = array<i32>} : memref<8x24xf32, #tpu.memory_space<vmem>>, vector<8x24xf32>,
    return
  }
  func.func @transform_0(%arg0: i32) -> (i32, i32) {
    %c0_i32 = arith.constant 0 : i32
    %c0_i32_0 = arith.constant 0 : i32
    return %arg0, %c0_i32 : i32, i32
  }
  func.func @transform_1(%arg0: i32) -> (i32, i32) {
    %c0_i32 = arith.constant 0 : i32
    %c0_i32_0 = arith.constant 0 : i32
    %c0_i32_1 = arith.constant 0 : i32
    return %c0_i32, %c0_i32_0 : i32, i32
  }
  func.func @transform_2(%arg0: i32) -> (i32, i32) {
    %c0_i32 = arith.constant 0 : i32
    %c0_i32_0 = arith.constant 0 : i32
    %c0_i32_1 = arith.constant 0 : i32
    return %c0_i32, %c0_i32_0 : i32, i32
  }
  func.func @transform_3(%arg0: i32) -> (i32, i32) {
    %c0_i32 = arith.constant 0 : i32
    %c0_i32_0 = arith.constant 0 : i32
    return %arg0, %c0_i32 : i32, i32
  }
}

</mosaic_0001>

<bundles_post_ra>
// kernel: tile.8
= control target key start
LH: loop header
LB: loop body
LE: loop exit
PB: predicated region body
PF: predicated region fallthrough
CT: control target
= control target key end

     0   :  { %s22_s0 = inlined_call_operand.vmem [shape: f32[3], index: 0, kind: input, shape index: {}]   ;;  %s23_s1 = inlined_call_operand.vmem [shape: f32[8,3], index: 1, kind: output, shape index: {}]  }
   0x1   :  { %v4_v0 = vld [vmem:[%s22_s0] ss:$0 sm:$0xff] }
   0x2   :  { %5 = vst [vmem:[%s23_s1] sm:$0xff] %v4_v0 }

// kernel: tile.9
= control target key start
LH: loop header
LB: loop body
LE: loop exit
PB: predicated region body
PF: predicated region fallthrough
CT: control target
= control target key end

     0   :  { %s67_s10 = smov 21   ;;  %s68_s11 = smov 15   ;;  %vm3_vm0 = vcmask 23552   ;;  %vm9_vm1 = vcmask 195752   ;;  %vm15_vm2 = vcmask 171152   ;;  %vm21_vm3 = vcmask 146552   ;;  %s111_s0 = inlined_call_operand.vmem [shape: f32[8,3], index: 0, kind: input, shape index: {}]   ;;  %s112_s1 = inlined_call_operand.vmem [shape: f32[1,24], index: 1, kind: output, shape index: {}]  }
   0x1   :  { %v53_v0 = vld [vmem:[%s111_s0 + $0x7] sm:$0x1]   ;;  %v55_v1 = vld [vmem:[%s111_s0 + $0x5] sm:$0x1]   ;;  %v54_v2 = vld [vmem:[%s111_s0 + $0x6] sm:$0x1]  }
   0x2   :  { %7 = vrot.lane.b32.xlu0 %v53_v0, %s67_s10  ;;  %19 = vrot.lane.b32.xlu1 %v55_v1, %s68_s11  ;;  %v56_v3 = vld [vmem:[%s111_s0 + $0x4] sm:$0x1]   ;;  %v2_v4 = vld [vmem:[%s111_s0] sm:$0x1]   ;;  %s69_s18 = smov 18   ;;  %s70_s19 = smov 12  }
   0x3   :  { %4 = vst.msk [vmem:[#allocation0] sm:$0x1] %vm3_vm0, %v2_v4   ;;  %v57_v5 = vld [vmem:[%s111_s0 + $0x3] sm:$0x1]   ;;  %v58_v6 = vld [vmem:[%s111_s0 + $0x2] sm:$0x1]  }
   0x4   :  { %s71_s24 = smov 9   ;;  %s72_s25 = smov 6   ;;  %v59_v7 = vld [vmem:[%s111_s0 + $0x1] sm:$0x1]   ;;  %vm27_vm4 = vcmask 121952   ;;  %vm33_vm5 = vcmask 97352  }
   0x5   :  { %s73_s0 = smov 3   ;;  %vm39_vm6 = vcmask 72752   ;;  %vm45_vm7 = vcmask 48152  }
   0x6   :  { %13 = vrot.lane.b32.xlu0 %v54_v2, %s69_s18  ;;  %25 = vrot.lane.b32.xlu1 %v56_v3, %s70_s19 }
   0xa   :  { %31 = vrot.lane.b32.xlu0 %v57_v5, %s71_s24  ;;  %37 = vrot.lane.b32.xlu1 %v58_v6, %s72_s25 }
   0xe   :  { %43 = vrot.lane.b32.xlu0 %v59_v7, %s73_s0 }
  0x74   :  { %v8_v8 = vpop.permute.xlu0 %7   ;;  %v20_v9 = vpop.permute.xlu1 %19  }
  0x75   :  { %10 = vst.msk [vmem:[#allocation0] sm:$0x1] %vm9_vm1, %v8_v8  }
  0x78   :  { %v14_v10 = vpop.permute.xlu0 %13   ;;  %v26_v11 = vpop.permute.xlu1 %25  }
  0x79   :  { %16 = vst.msk [vmem:[#allocation0] sm:$0x1] %vm15_vm2, %v14_v10  }
  0x7a   :  { %22 = vst.msk [vmem:[#allocation0] sm:$0x1] %vm21_vm3, %v20_v9  }
  0x7b   :  { %28 = vst.msk [vmem:[#allocation0] sm:$0x1] %vm27_vm4, %v26_v11  }
  0x7c   :  { %v32_v12 = vpop.permute.xlu0 %31   ;;  %v38_v13 = vpop.permute.xlu1 %37  }
  0x7d   :  { %34 = vst.msk [vmem:[#allocation0] sm:$0x1] %vm33_vm5, %v32_v12  }
  0x7e   :  { %40 = vst.msk [vmem:[#allocation0] sm:$0x1] %vm39_vm6, %v38_v13  }
  0x80   :  { %v44_v14 = vpop.permute.xlu0 %43  }
  0x81   :  { %46 = vst.msk [vmem:[#allocation0] sm:$0x1] %vm45_vm7, %v44_v14  }
  0x88   :  { %v50_v15 = vld [vmem:[#allocation0] sm:$0x1] }
  0x89   :  { %52 = vst [vmem:[%s112_s1] sm:$0x1] %v50_v15 }

// kernel: littlenn_forward.1
= control target key start
LH: loop header
LB: loop body
LE: loop exit
PB: predicated region body
PF: predicated region fallthrough
CT: control target
= control target key end

     0   :  { %v197_v0 = vmov 0.0|0.0   ;;  %vm198_vm0 = vmmov 0   ;;  %v199_v4 = vmov 0.0   ;;  %vm109_vm1 = vcmask 195584   ;;  %s277_s1 = inlined_call_operand.vmem [shape: f32[128,24], index: 1, kind: input, shape index: {}]   ;;  %s278_s0 = inlined_call_operand.vmem [shape: f32[8,128], index: 0, kind: input, shape index: {}]   ;;  %s279_s2 = inlined_call_operand.vmem [shape: f32[1,24], index: 2, kind: input, shape index: {}]   ;;  %s280_s3 = inlined_call_operand.vmem [shape: f32[8,24], index: 3, kind: output, shape index: {}]  }
   0x1   :  { %168 = vmatprep.subr.bf16.mxu0 %v197_v0  ;;  %v15_v1 = vld [vmem:[%s277_s1] sm:$0xff]  ;;  %v16_v2 = vld [vmem:[%s277_s1 + $0x8] sm:$0xff]  ;;  %v17_v3 = vld [vmem:[%s277_s1 + $0x10] sm:$0xff]  ;;  %165 = vmatprep.mubr.msk.f32.mxu0 %vm198_vm0, %v199_v4 }
   0x2   :  { %v169_v5 = vpack.c.bf16 %v16_v2, %v15_v1  ;;  %v18_v6 = vld [vmem:[%s277_s1 + $0x18] sm:$0xff]  ;;  %v19_v8 = vld [vmem:[%s277_s1 + $0x20] sm:$0xff]  ;;  %v20_v9 = vld [vmem:[%s277_s1 + $0x28] sm:$0xff] }
   0x3   :  { %v172_v7 = vpack.c.bf16 %v18_v6, %v17_v3  ;;  %v175_v10 = vpack.c.bf16 %v20_v9, %v19_v8  ;;  %v21_v11 = vld [vmem:[%s277_s1 + $0x30] sm:$0xff]  ;;  %v22_v12 = vld [vmem:[%s277_s1 + $0x38] sm:$0xff]  ;;  %v23_v14 = vld [vmem:[%s277_s1 + $0x40] sm:$0xff] }
   0x4   :  { %170 = vmatpush3.bf16.msra.mxu0 %v169_v5  ;;  %v178_v13 = vpack.c.bf16 %v22_v12, %v21_v11  ;;  %v24_v15 = vld [vmem:[%s277_s1 + $0x48] sm:$0xff]  ;;  %v25_v17 = vld [vmem:[%s277_s1 + $0x50] sm:$0xff]  ;;  %v26_v18 = vld [vmem:[%s277_s1 + $0x58] sm:$0xff] }
   0x5   :  { %171 = vmatprep.subr.bf16.mxu0 %v197_v0  ;;  %v181_v16 = vpack.c.bf16 %v24_v15, %v23_v14  ;;  %v184_v19 = vpack.c.bf16 %v26_v18, %v25_v17  ;;  %v27_v20 = vld [vmem:[%s277_s1 + $0x60] sm:$0xff]  ;;  %v28_v21 = vld [vmem:[%s277_s1 + $0x68] sm:$0xff]  ;;  %v29_v23 = vld [vmem:[%s277_s1 + $0x70] sm:$0xff] }
   0x6   :  { %v187_v22 = vpack.c.bf16 %v28_v21, %v27_v20  ;;  %v30_v24 = vld [vmem:[%s277_s1 + $0x78] sm:$0xff]  ;;  %v14_v26 = vld [vmem:[%s278_s0] sm:$0xff] }
   0x7   :  { %v190_v25 = vpack.c.bf16 %v30_v24, %v29_v23  ;;  %v115_v27 = vld [vmem:[%s279_s2] ss:$0 sm:$0xff] }
   0x8   :  { %173 = vmatpush3.bf16.msra.mxu0 %v172_v7 }
   0x9   :  { %174 = vmatprep.subr.bf16.mxu0 %v197_v0 }
   0xc   :  { %176 = vmatpush3.bf16.msra.mxu0 %v175_v10 }
   0xd   :  { %177 = vmatprep.subr.bf16.mxu0 %v197_v0 }
  0x10   :  { %179 = vmatpush3.bf16.msra.mxu0 %v178_v13 }
  0x11   :  { %180 = vmatprep.subr.bf16.mxu0 %v197_v0 }
  0x14   :  { %182 = vmatpush3.bf16.msra.mxu0 %v181_v16 }
  0x15   :  { %183 = vmatprep.subr.bf16.mxu0 %v197_v0 }
  0x18   :  { %185 = vmatpush3.bf16.msra.mxu0 %v184_v19 }
  0x19   :  { %186 = vmatprep.subr.bf16.mxu0 %v197_v0 }
  0x1c   :  { %188 = vmatpush3.bf16.msra.mxu0 %v187_v22 }
  0x1d   :  { %189 = vmatprep.subr.bf16.mxu0 %v197_v0 }
  0x20   :  { %191 = vmatpush3.bf16.msra.mxu0 %v190_v25 }
  0x23   :  { %166 = vmatmul.mubr.f32.vlgmr.msra.gmra.mrb[0].mxu0 %v14_v26 }
  0xf6   :  { %v104_v28 = vpop.f32.mrb[0].mxu0 }
  0xf7   :  { %v105_v29 = vadd.f32 %v115_v27, %v104_v28  ;;  %v167_v30 = vpop.f32.mrb[1].mxu0 }
  0xf9   :  { %195 = vtanh.f32 %v105_v29 }
 0x103   :  { %v196_v31 = vpop.eup %195 }
 0x104   :  { %110 = vst.msk [vmem:[%s280_s3] sm:$0xff] %vm109_vm1, %v196_v31 }

</bundles_post_ra>
